<compile_context>
chip_gen: v7x
topology: tpu7x:2x2x1
jax: 0.10.0
libtpu: 0.0.40
codegen_flags: <defaults>
</compile_context>

<pallas_src>
import functools
import math

import jax
import jax.numpy as jnp
from jax.experimental import pallas as pl
from jax.experimental.pallas import tpu as pltpu


def _round_up(x, m):
    return ((x + m - 1) // m) * m


def _lcm(a, b):
    return a * b // math.gcd(a, b)


# ----------------------------------------------------------------------------
# Kernel 1: LayerNorm(c_m) -> fused [linear_1 | linear_2] -> * mask
# One fused (tile_rows, 2H) bf16 output (lane-dense, single store).
# ----------------------------------------------------------------------------
def _ln_proj_kernel(m_ref, mask_ref, g_ref, beta_ref, w12_ref, b12_ref, ab_ref,
                    *, ln_eps):
    x = m_ref[...].astype(jnp.float32)                         # (TR, Cm)
    mu = jnp.mean(x, axis=-1, keepdims=True)
    xc = x - mu
    var = jnp.mean(xc * xc, axis=-1, keepdims=True)
    ln = xc * jax.lax.rsqrt(var + ln_eps)
    ln = ln * g_ref[...].astype(jnp.float32) + beta_ref[...].astype(jnp.float32)
    y = jnp.dot(ln, w12_ref[...].astype(jnp.float32),
                preferred_element_type=jnp.float32)            # (TR, 2H)
    y = (y + b12_ref[...].astype(jnp.float32)) * mask_ref[...].astype(jnp.float32)
    ab_ref[...] = y.astype(ab_ref.dtype)


# ----------------------------------------------------------------------------
# Kernel 2: outer product mean over N_seq + linear_out + mask normalization.
#   aT_ref: (H, TI, S)   bf16, aT[c, i, s] = a[s, i, c]
#   b_ref : (S, TJ*H)    bf16, b[s, j*H + e]
#   mi/mj : (TI, S)/(TJ, S) f32 residue-major mask rows
#   w_ref : (H*H, Cz)    bf16, row index = c*H + e
#   bo_ref: (1, Cz)      f32
#   o_ref : (TI, TJ, Cz) f32
#   q_ref : (TI*TJ, H*H) bf16 VMEM scratch (flattened outer product)
# ----------------------------------------------------------------------------
def _opm_kernel(aT_ref, b_ref, mi_ref, mj_ref, w_ref, bo_ref, o_ref, q_ref,
                *, eps, group, proj_rows):
    H, TI = aT_ref.shape[0], aT_ref.shape[1]
    TJ = mj_ref.shape[0]
    Cz = w_ref.shape[1]
    cdt = q_ref.dtype

    b_blk = b_ref[...]                                         # (S, TJ*H), hoisted

    # --- outer product over N_seq -> lane-dense group stores ----------------
    # Per channel group: `group` MXU-filling matmuls (TI,S)@(S,TJ*H), each
    # relayouted once to (TI*TJ, H), concatenated to a (TI*TJ, group*H) slab
    # (group*H == 128 lanes for production H=32) and stored full-width.
    n_groups = H // group
    for g in range(n_groups):
        pieces = []
        for u in range(group):
            c = g * group + u
            p_c = jnp.dot(aT_ref[c], b_blk,
                          preferred_element_type=jnp.float32)  # (TI, TJ*H) f32
            pieces.append(p_c.astype(cdt).reshape(TI * TJ, H))
        slab = pieces[0] if group == 1 else jnp.concatenate(pieces, axis=1)
        q_ref[:, g * group * H:(g + 1) * group * H] = slab

    # --- mask normalization: norm[i, j] = sum_s m[s,i] * m[s,j] -------------
    norm = jax.lax.dot_general(
        mi_ref[...].astype(jnp.float32), mj_ref[...].astype(jnp.float32),
        (((1,), (1,)), ((), ())), preferred_element_type=jnp.float32) + eps
    inv = pl.reciprocal(norm, approx=False)                    # (TI, TJ)

    w = w_ref[...]                                             # (H*H, Cz) bf16
    bo = bo_ref[...].astype(jnp.float32)                       # (1, Cz)

    # --- single full-depth projection (K = H*H), chunked over i-rows --------
    for r0 in range(0, TI, proj_rows):
        ri = min(proj_rows, TI - r0)
        z = jnp.dot(q_ref[r0 * TJ:(r0 + ri) * TJ, :], w,
                    preferred_element_type=jnp.float32)        # (ri*TJ, Cz)
        z = (z + bo).reshape(ri, TJ, Cz) * inv[r0:r0 + ri][:, :, None]
        o_ref[r0:r0 + ri] = z.astype(o_ref.dtype)


# ----------------------------------------------------------------------------
# Wrapper
# ----------------------------------------------------------------------------
def outer_product_mean(m, mask, params, *, eps=1e-3, ln_eps=1e-5,
                       compute_dtype=jnp.bfloat16,
                       tile_rows=2048, tile_i=128, tile_j=32,
                       vmem_limit_bytes=56 * 1024 * 1024):
    S, N, Cm = m.shape
    H = params["w1"].shape[1]
    Cz = params["wo"].shape[1]
    cdt = compute_dtype
    mask = mask.astype(jnp.float32)

    # ---- residue-axis tiling: (tile_j*H) must be lane-tileable (x128) ------
    unit_j = _lcm(8, 128 // math.gcd(H, 128))
    tj = min(_round_up(max(tile_j, 1), unit_j), _round_up(N, unit_j))
    ti = min(_round_up(max(tile_i, 1), 8), _round_up(N, 8))
    Np = _round_up(N, _lcm(ti, tj))
    if Np != N:
        # Padded residues have mask == 0 -> zero a/b; padded output tiles hold
        # bo/eps garbage and are sliced off below.
        m = jnp.pad(m, ((0, 0), (0, Np - N), (0, 0)))
        mask = jnp.pad(mask, ((0, 0), (0, Np - N)))

    # ---- kernel 1: LayerNorm + fused linear_1|linear_2 + masking -----------
    rows = S * Np
    tr = min(_round_up(tile_rows, 8), rows)
    rows_p = _round_up(rows, tr)
    m_rows = m.reshape(rows, Cm)
    mask_rows = mask.reshape(rows, 1)
    if rows_p != rows:
        m_rows = jnp.pad(m_rows, ((0, rows_p - rows), (0, 0)))
        mask_rows = jnp.pad(mask_rows, ((0, rows_p - rows), (0, 0)))

    w12 = jnp.concatenate([params["w1"], params["w2"]], axis=1).astype(jnp.float32)
    b12 = jnp.concatenate([params["b1"], params["b2"]]).reshape(1, 2 * H).astype(jnp.float32)

    k1 = functools.partial(_ln_proj_kernel, ln_eps=ln_eps)
    k1_cost = pl.CostEstimate(
        flops=int(rows_p * (4 * Cm * H + 8 * Cm)),
        transcendentals=int(rows_p),
        bytes_accessed=int(rows_p * (4 * Cm + 2 * 2 * H + 4)))
    ab = pl.pallas_call(
        k1,
        grid=(rows_p // tr,),
        in_specs=[
            pl.BlockSpec((tr, Cm), lambda r: (r, 0)),
            pl.BlockSpec((tr, 1), lambda r: (r, 0)),
            pl.BlockSpec((1, Cm), lambda r: (0, 0)),
            pl.BlockSpec((1, Cm), lambda r: (0, 0)),
            pl.BlockSpec((Cm, 2 * H), lambda r: (0, 0)),
            pl.BlockSpec((1, 2 * H), lambda r: (0, 0)),
        ],
        out_specs=pl.BlockSpec((tr, 2 * H), lambda r: (r, 0)),
        out_shape=jax.ShapeDtypeStruct((rows_p, 2 * H), cdt),
        compiler_params=pltpu.CompilerParams(dimension_semantics=("parallel",)),
        cost_estimate=k1_cost,
    )(m_rows, mask_rows,
      params["gamma"].reshape(1, Cm).astype(jnp.float32),
      params["beta"].reshape(1, Cm).astype(jnp.float32),
      w12, b12)

    ab = ab[:rows]
    # ---- layout glue: one small bf16 host transpose for the `a` side -------
    a3 = ab[:, :H].reshape(S, Np, H).transpose(2, 1, 0)        # (H, Np, S) bf16
    b_mat = ab[:, H:].reshape(S, Np * H)                       # (S, Np*H) bf16
    mask_t = mask.T                                            # (Np, S) f32
    wo = params["wo"].astype(cdt)                              # (H*H, Cz)
    bo = params["bo"].reshape(1, Cz).astype(jnp.float32)

    # Channel-group width: largest divisor of H with group*H <= 128 lanes.
    group = 1
    for d in range(1, H + 1):
        if H % d == 0 and d * H <= 128:
            group = d
    proj_rows = max(1, min(ti, max(1, 1024 // tj)))

    k2 = functools.partial(_opm_kernel, eps=eps, group=group, proj_rows=proj_rows)
    k2_cost = pl.CostEstimate(
        flops=int(2 * Np * Np * H * H * (S + Cz)),
        transcendentals=int(Np * Np),
        bytes_accessed=int((Np // ti) * Np * H * S * 2 + Np * H * S * 2
                           + Np * Np * Cz * 4 + 2 * Np * S * 4))
    out = pl.pallas_call(
        k2,
        grid=(Np // ti, Np // tj),
        in_specs=[
            pl.BlockSpec((H, ti, S), lambda i, j: (0, i, 0)),
            pl.BlockSpec((S, tj * H), lambda i, j: (0, j)),
            pl.BlockSpec((ti, S), lambda i, j: (i, 0)),
            pl.BlockSpec((tj, S), lambda i, j: (j, 0)),
            pl.BlockSpec((H * H, Cz), lambda i, j: (0, 0)),
            pl.BlockSpec((1, Cz), lambda i, j: (0, 0)),
        ],
        out_specs=pl.BlockSpec((ti, tj, Cz), lambda i, j: (i, j, 0)),
        out_shape=jax.ShapeDtypeStruct((Np, Np, Cz), jnp.float32),
        scratch_shapes=[pltpu.VMEM((ti * tj, H * H), cdt)],
        compiler_params=pltpu.CompilerParams(
            dimension_semantics=("parallel", "parallel"),
            vmem_limit_bytes=int(vmem_limit_bytes)),
        cost_estimate=k2_cost,
    )(a3, b_mat, mask_t, mask_t, wo, bo)

    if Np != N:
        out = out[:N, :N]
    return out


# ----------------------------------------------------------------------------
# Pure-JAX reference (mirrors the PyTorch forward).  If cast_dtype is given,
# a/b, the flattened outer product and wo are rounded at exactly the points
# the bf16 kernel rounds, so a tight tolerance is meaningful.
# ----------------------------------------------------------------------------
def reference(m, mask, params, eps=1e-3, ln_eps=1e-5, cast_dtype=None):
    def rnd(x):
        return x.astype(cast_dtype).astype(jnp.float32) if cast_dtype is not None else x
    mask = mask.astype(jnp.float32)
    mu = jnp.mean(m, axis=-1, keepdims=True)
    var = jnp.mean((m - mu) ** 2, axis=-1, keepdims=True)
    ln = (m - mu) * jax.lax.rsqrt(var + ln_eps) * params["gamma"] + params["beta"]
    a = rnd((ln @ params["w1"] + params["b1"]) * mask[..., None])
    b = rnd((ln @ params["w2"] + params["b2"]) * mask[..., None])
    outer = rnd(jnp.einsum('sic,sje->ijce', a, b))
    outer = outer.reshape(outer.shape[:-2] + (-1,))
    out = outer @ rnd(params["wo"]) + params["bo"]
    norm = jnp.einsum('si,sj->ij', mask, mask)[..., None] + eps
    return out / norm


if __name__ == "__main__":
    # TODO(synk): the chunk_size / chunk_layer path is a memory-saving loop with
    # identical math and is not reproduced; inplace_safe only affects aliasing.
    S, N, Cm, H, Cz = 8, 16, 16, 4, 8   # N_seq, N_res, c_m, c_hidden, c_z
    key = jax.random.PRNGKey(0)
    ks = jax.random.split(key, 10)
    m = jax.random.normal(ks[0], (S, N, Cm), jnp.float32)
    mask = (jax.random.uniform(ks[1], (S, N)) > 0.2).astype(jnp.float32)
    params = dict(
        gamma=1.0 + 0.1 * jax.random.normal(ks[2], (Cm,), jnp.float32),
        beta=0.1 * jax.random.normal(ks[3], (Cm,), jnp.float32),
        w1=0.3 * jax.random.normal(ks[4], (Cm, H), jnp.float32),
        b1=0.3 * jax.random.normal(ks[5], (H,), jnp.float32),
        w2=0.3 * jax.random.normal(ks[6], (Cm, H), jnp.float32),
        b2=0.3 * jax.random.normal(ks[7], (H,), jnp.float32),
        # NOTE: wo is (c_hidden**2, c_z) with row index c*c_hidden + e, i.e.
        # the transpose of a raw PyTorch linear_out.weight.
        wo=0.3 * jax.random.normal(ks[8], (H * H, Cz), jnp.float32),
        bo=0.3 * jax.random.normal(ks[9], (Cz,), jnp.float32),
    )

    out = outer_product_mean(m, mask, params)
    out = jax.block_until_ready(out)
    assert out.shape == (N, N, Cz), out.shape

    ref_bf = reference(m, mask, params, cast_dtype=jnp.bfloat16)
    ref_32 = reference(m, mask, params)
    scale = float(jnp.max(jnp.abs(ref_32)))
    err_bf = float(jnp.max(jnp.abs(out - ref_bf)))
    err_32 = float(jnp.max(jnp.abs(out - ref_32)))
    # Tight check vs. a reference rounding at the same points as the kernel,
    # loose sanity check vs. the pure-f32 reference.
    assert err_bf <= 5e-3 + 2e-3 * scale, (err_bf, scale)
    assert err_32 <= 5e-2 * (scale + 1.0), (err_32, scale)
    print("KERNEL_OK")
</pallas_src>

<mosaic_0001>
module attributes {stable_mosaic.version = 11 : i64} {
  func.func @_ln_proj_kernel(%arg0: i32, %arg1: memref<256x16xf32, #tpu.memory_space<vmem>>, %arg2: memref<256x1xf32, #tpu.memory_space<vmem>>, %arg3: memref<1x16xf32, #tpu.memory_space<vmem>>, %arg4: memref<1x16xf32, #tpu.memory_space<vmem>>, %arg5: memref<16x8xf32, #tpu.memory_space<vmem>>, %arg6: memref<1x8xf32, #tpu.memory_space<vmem>>, %arg7: memref<256x8xbf16, #tpu.memory_space<vmem>>) attributes {dimension_semantics = [#tpu.dimension_semantics<parallel>], iteration_bounds = array<i64: 1>, scalar_prefetch = 0 : i64, scratch_operands = 0 : i64, tpu.core_type = #tpu.core_type<tc>, window_params = [{transform_indices = @transform_0, window_bounds = array<i64: 256, 16>}, {transform_indices = @transform_1, window_bounds = array<i64: 256, 1>}, {pipeline_mode = #tpu.pipeline_mode<synchronous>, transform_indices = @transform_2, window_bounds = array<i64: 1, 16>}, {pipeline_mode = #tpu.pipeline_mode<synchronous>, transform_indices = @transform_3, window_bounds = array<i64: 1, 16>}, {pipeline_mode = #tpu.pipeline_mode<synchronous>, transform_indices = @transform_4, window_bounds = array<i64: 16, 8>}, {pipeline_mode = #tpu.pipeline_mode<synchronous>, transform_indices = @transform_5, window_bounds = array<i64: 1, 8>}, {transform_indices = @transform_6, window_bounds = array<i64: 256, 8>}]} {
    %c0 = arith.constant 0 : index
    %c0_0 = arith.constant 0 : index
    %0 = vector.load %arg1[%c0, %c0_0] : memref<256x16xf32, #tpu.memory_space<vmem>>, vector<256x16xf32>
    %cst = arith.constant dense<0.000000e+00> : vector<256xf32>
    %1 = vector.multi_reduction <add>, %0, %cst [1] : vector<256x16xf32> to vector<256xf32>
    %2 = vector.shape_cast %1 : vector<256xf32> to vector<256x1xf32>
    %cst_1 = arith.constant 1.600000e+01 : f32
    %3 = vector.broadcast %cst_1 : f32 to vector<256x1xf32>
    %4 = arith.divf %2, %3 : vector<256x1xf32>
    %5 = vector.broadcast %4 : vector<256x1xf32> to vector<256x16xf32>
    %6 = arith.subf %0, %5 : vector<256x16xf32>
    %7 = arith.mulf %6, %6 : vector<256x16xf32>
    %cst_2 = arith.constant dense<0.000000e+00> : vector<256xf32>
    %8 = vector.multi_reduction <add>, %7, %cst_2 [1] : vector<256x16xf32> to vector<256xf32>
    %9 = vector.shape_cast %8 : vector<256xf32> to vector<256x1xf32>
    %cst_3 = arith.constant 1.600000e+01 : f32
    %10 = vector.broadcast %cst_3 : f32 to vector<256x1xf32>
    %11 = arith.divf %9, %10 : vector<256x1xf32>
    %cst_4 = arith.constant 9.99999974E-6 : f32
    %12 = vector.broadcast %cst_4 : f32 to vector<256x1xf32>
    %13 = arith.addf %11, %12 : vector<256x1xf32>
    %14 = math.rsqrt %13 : vector<256x1xf32>
    %15 = vector.broadcast %14 : vector<256x1xf32> to vector<256x16xf32>
    %16 = arith.mulf %6, %15 : vector<256x16xf32>
    %c0_5 = arith.constant 0 : index
    %c0_6 = arith.constant 0 : index
    %17 = vector.load %arg3[%c0_5, %c0_6] : memref<1x16xf32, #tpu.memory_space<vmem>>, vector<1x16xf32>
    %18 = vector.broadcast %17 : vector<1x16xf32> to vector<256x16xf32>
    %19 = arith.mulf %16, %18 : vector<256x16xf32>
    %c0_7 = arith.constant 0 : index
    %c0_8 = arith.constant 0 : index
    %20 = vector.load %arg4[%c0_7, %c0_8] : memref<1x16xf32, #tpu.memory_space<vmem>>, vector<1x16xf32>
    %21 = vector.broadcast %20 : vector<1x16xf32> to vector<256x16xf32>
    %22 = arith.addf %19, %21 : vector<256x16xf32>
    %c0_9 = arith.constant 0 : index
    %c0_10 = arith.constant 0 : index
    %23 = vector.load %arg5[%c0_9, %c0_10] : memref<16x8xf32, #tpu.memory_space<vmem>>, vector<16x8xf32>
    %cst_11 = arith.constant dense<0.000000e+00> : vector<256x8xf32>
    %24 = tpu.matmul %22, %23, %cst_11 {dimension_numbers = #tpu.dot_dimension_numbers<[1], [0], [0], [1], [0, 0, 1, 1], [], []>} : vector<256x16xf32>, vector<16x8xf32>, vector<256x8xf32> -> vector<256x8xf32>
    %c0_12 = arith.constant 0 : index
    %c0_13 = arith.constant 0 : index
    %25 = vector.load %arg6[%c0_12, %c0_13] : memref<1x8xf32, #tpu.memory_space<vmem>>, vector<1x8xf32>
    %26 = vector.broadcast %25 : vector<1x8xf32> to vector<256x8xf32>
    %27 = arith.addf %24, %26 : vector<256x8xf32>
    %c0_14 = arith.constant 0 : index
    %c0_15 = arith.constant 0 : index
    %28 = vector.load %arg2[%c0_14, %c0_15] : memref<256x1xf32, #tpu.memory_space<vmem>>, vector<256x1xf32>
    %29 = vector.broadcast %28 : vector<256x1xf32> to vector<256x8xf32>
    %30 = arith.mulf %27, %29 : vector<256x8xf32>
    %31 = arith.truncf %30 : vector<256x8xf32> to vector<256x8xbf16>
    %c0_16 = arith.constant 0 : index
    %c0_17 = arith.constant 0 : index
    %32 = vector.load %arg7[%c0_16, %c0_17] : memref<256x8xbf16, #tpu.memory_space<vmem>>, vector<256x8xbf16>
    tpu.vector_store %arg7[%c0_16, %c0_17], %31 {strides = array<i32>} : memref<256x8xbf16, #tpu.memory_space<vmem>>, vector<256x8xbf16>,
    return
  }
  func.func @transform_0(%arg0: i32) -> (i32, i32) {
    %c0_i32 = arith.constant 0 : i32
    %c0_i32_0 = arith.constant 0 : i32
    return %arg0, %c0_i32 : i32, i32
  }
  func.func @transform_1(%arg0: i32) -> (i32, i32) {
    %c0_i32 = arith.constant 0 : i32
    %c0_i32_0 = arith.constant 0 : i32
    return %arg0, %c0_i32 : i32, i32
  }
  func.func @transform_2(%arg0: i32) -> (i32, i32) {
    %c0_i32 = arith.constant 0 : i32
    %c0_i32_0 = arith.constant 0 : i32
    %c0_i32_1 = arith.constant 0 : i32
    return %c0_i32, %c0_i32_0 : i32, i32
  }
  func.func @transform_3(%arg0: i32) -> (i32, i32) {
    %c0_i32 = arith.constant 0 : i32
    %c0_i32_0 = arith.constant 0 : i32
    %c0_i32_1 = arith.constant 0 : i32
    return %c0_i32, %c0_i32_0 : i32, i32
  }
  func.func @transform_4(%arg0: i32) -> (i32, i32) {
    %c0_i32 = arith.constant 0 : i32
    %c0_i32_0 = arith.constant 0 : i32
    %c0_i32_1 = arith.constant 0 : i32
    return %c0_i32, %c0_i32_0 : i32, i32
  }
  func.func @transform_5(%arg0: i32) -> (i32, i32) {
    %c0_i32 = arith.constant 0 : i32
    %c0_i32_0 = arith.constant 0 : i32
    %c0_i32_1 = arith.constant 0 : i32
    return %c0_i32, %c0_i32_0 : i32, i32
  }
  func.func @transform_6(%arg0: i32) -> (i32, i32) {
    %c0_i32 = arith.constant 0 : i32
    %c0_i32_0 = arith.constant 0 : i32
    return %arg0, %c0_i32 : i32, i32
  }
}

</mosaic_0001>

<bundles_post_ra>
// kernel: tpu_custom_call.1
= control target key start
LH: loop header
LB: loop body
LE: loop exit
PB: predicated region body
PF: predicated region fallthrough
CT: control target
= control target key end

     0   :  { %vm55_vm0 = vcmask 130048   ;;  %vm1233_vm1 = vcmask 60416   ;;  %s2421_s0 = inlined_call_operand.vmem [shape: f32[256,16], index: 0, kind: input, shape index: {}]   ;;  %s2422_s4 = inlined_call_operand.vmem [shape: f32[16,8], index: 4, kind: input, shape index: {}]   ;;  %s2423_s1 = inlined_call_operand.vmem [shape: f32[256,1], index: 1, kind: input, shape index: {}]   ;;  %s2424_s2 = inlined_call_operand.vmem [shape: f32[1,16], index: 2, kind: input, shape index: {}]   ;;  %s2425_s3 = inlined_call_operand.vmem [shape: f32[1,16], index: 3, kind: input, shape index: {}]   ;;  %s2426_s5 = inlined_call_operand.vmem [shape: f32[1,8], index: 5, kind: input, shape index: {}]   ;;  %s2427_s6 = inlined_call_operand.vmem [shape: bf16[256,8], index: 6, kind: output, shape index: {}]  }
   0x1   :  { %v1567_v0 = vld [vmem:[%s2421_s0] sm:$0xff]  ;;  %v1572_v1 = vld [vmem:[%s2421_s0 + $0x8] sm:$0xff]  ;;  %v1595_v8 = vld [vmem:[%s2421_s0 + $0x10] sm:$0xff] }
   0x2   :  { %v1577_v2 = vld [vmem:[%s2421_s0 + $0x80] sm:$0xff]  ;;  %v56_v3 = vsel %vm55_vm0, %v1567_v0, 0.0  ;;  %v59_v4 = vsel %vm55_vm0, %v1572_v1, 0.0  ;;  %v1586_v5 = vld [vmem:[%s2421_s0 + $0x88] sm:$0xff]  ;;  %v1600_v9 = vld [vmem:[%s2421_s0 + $0x90] sm:$0xff]  ;;  %v62_v10 = vsel %vm55_vm0, %v1595_v8, 0.0 }
   0x3   :  { %57 = vadd.xlane.f32.xlu0 %v56_v3  ;;  %60 = vadd.xlane.f32.xlu1 %v59_v4  ;;  %v104_v6 = vsel %vm55_vm0, %v1577_v2, 0.0  ;;  %v107_v7 = vsel %vm55_vm0, %v1586_v5, 0.0  ;;  %v110_v11 = vsel %vm55_vm0, %v1600_v9, 0.0  ;;  %v1609_v12 = vld [vmem:[%s2421_s0 + $0x18] sm:$0xff]  ;;  %v1623_v16 = vld [vmem:[%s2421_s0 + $0x20] sm:$0xff]  ;;  %v1637_v20 = vld [vmem:[%s2421_s0 + $0x28] sm:$0xff] }
   0x4   :  { %v1614_v13 = vld [vmem:[%s2421_s0 + $0x98] sm:$0xff]  ;;  %v65_v14 = vsel %vm55_vm0, %v1609_v12, 0.0  ;;  %v1628_v17 = vld [vmem:[%s2421_s0 + $0xa0] sm:$0xff]  ;;  %v68_v18 = vsel %vm55_vm0, %v1623_v16, 0.0  ;;  %v1642_v21 = vld [vmem:[%s2421_s0 + $0xa8] sm:$0xff]  ;;  %v71_v22 = vsel %vm55_vm0, %v1637_v20, 0.0 }
   0x5   :  { %v113_v15 = vsel %vm55_vm0, %v1614_v13, 0.0  ;;  %v116_v19 = vsel %vm55_vm0, %v1628_v17, 0.0  ;;  %v119_v23 = vsel %vm55_vm0, %v1642_v21, 0.0  ;;  %v1651_v24 = vld [vmem:[%s2421_s0 + $0x30] sm:$0xff]  ;;  %v1665_v28 = vld [vmem:[%s2421_s0 + $0x38] sm:$0xff]  ;;  %v1679_v32 = vld [vmem:[%s2421_s0 + $0x40] sm:$0xff] }
   0x6   :  { %v1656_v25 = vld [vmem:[%s2421_s0 + $0xb0] sm:$0xff]  ;;  %v74_v26 = vsel %vm55_vm0, %v1651_v24, 0.0  ;;  %v1670_v29 = vld [vmem:[%s2421_s0 + $0xb8] sm:$0xff]  ;;  %v77_v30 = vsel %vm55_vm0, %v1665_v28, 0.0  ;;  %v1684_v33 = vld [vmem:[%s2421_s0 + $0xc0] sm:$0xff]  ;;  %v80_v34 = vsel %vm55_vm0, %v1679_v32, 0.0 }
   0x7   :  { %105 = vadd.xlane.f32.xlu0 %v104_v6  ;;  %108 = vadd.xlane.f32.xlu1 %v107_v7  ;;  %v122_v27 = vsel %vm55_vm0, %v1656_v25, 0.0  ;;  %v125_v31 = vsel %vm55_vm0, %v1670_v29, 0.0  ;;  %v128_v35 = vsel %vm55_vm0, %v1684_v33, 0.0  ;;  %v1693_v36 = vld [vmem:[%s2421_s0 + $0x48] sm:$0xff]  ;;  %v1707_v40 = vld [vmem:[%s2421_s0 + $0x50] sm:$0xff]  ;;  %v1721_v44 = vld [vmem:[%s2421_s0 + $0x58] sm:$0xff] }
   0x8   :  { %v1698_v37 = vld [vmem:[%s2421_s0 + $0xc8] sm:$0xff]  ;;  %v83_v38 = vsel %vm55_vm0, %v1693_v36, 0.0  ;;  %v1712_v41 = vld [vmem:[%s2421_s0 + $0xd0] sm:$0xff]  ;;  %v86_v42 = vsel %vm55_vm0, %v1707_v40, 0.0  ;;  %v1726_v45 = vld [vmem:[%s2421_s0 + $0xd8] sm:$0xff]  ;;  %v89_v46 = vsel %vm55_vm0, %v1721_v44, 0.0 }
   0x9   :  { %v131_v39 = vsel %vm55_vm0, %v1698_v37, 0.0  ;;  %v134_v43 = vsel %vm55_vm0, %v1712_v41, 0.0  ;;  %v137_v47 = vsel %vm55_vm0, %v1726_v45, 0.0  ;;  %v1735_v48 = vld [vmem:[%s2421_s0 + $0x60] sm:$0xff]  ;;  %v1749_v52 = vld [vmem:[%s2421_s0 + $0x68] sm:$0xff]  ;;  %v1763_v56 = vld [vmem:[%s2421_s0 + $0x70] sm:$0xff] }
   0xa   :  { %v1740_v49 = vld [vmem:[%s2421_s0 + $0xe0] sm:$0xff]  ;;  %v92_v50 = vsel %vm55_vm0, %v1735_v48, 0.0  ;;  %v1754_v53 = vld [vmem:[%s2421_s0 + $0xe8] sm:$0xff]  ;;  %v95_v54 = vsel %vm55_vm0, %v1749_v52, 0.0  ;;  %v1768_v57 = vld [vmem:[%s2421_s0 + $0xf0] sm:$0xff]  ;;  %v98_v58 = vsel %vm55_vm0, %v1763_v56, 0.0 }
   0xb   :  { %63 = vadd.xlane.f32.xlu0 %v62_v10  ;;  %111 = vadd.xlane.f32.xlu1 %v110_v11  ;;  %v140_v51 = vsel %vm55_vm0, %v1740_v49, 0.0  ;;  %v143_v55 = vsel %vm55_vm0, %v1754_v53, 0.0  ;;  %v146_v59 = vsel %vm55_vm0, %v1768_v57, 0.0  ;;  %v1777_v60 = vld [vmem:[%s2421_s0 + $0x78] sm:$0xff] }
   0xc   :  { %v1782_v61 = vld [vmem:[%s2421_s0 + $0xf8] sm:$0xff]  ;;  %v101_v62 = vsel %vm55_vm0, %v1777_v60, 0.0 }
   0xd   :  { %v149_v63 = vsel %vm55_vm0, %v1782_v61, 0.0 }
   0xf   :  { %66 = vadd.xlane.f32.xlu0 %v65_v14  ;;  %114 = vadd.xlane.f32.xlu1 %v113_v15 }
  0x13   :  { %69 = vadd.xlane.f32.xlu0 %v68_v18  ;;  %117 = vadd.xlane.f32.xlu1 %v116_v19 }
  0x17   :  { %72 = vadd.xlane.f32.xlu0 %v71_v22  ;;  %120 = vadd.xlane.f32.xlu1 %v119_v23 }
  0x1b   :  { %75 = vadd.xlane.f32.xlu0 %v74_v26  ;;  %123 = vadd.xlane.f32.xlu1 %v122_v27 }
  0x1f   :  { %78 = vadd.xlane.f32.xlu0 %v77_v30  ;;  %126 = vadd.xlane.f32.xlu1 %v125_v31 }
  0x23   :  { %81 = vadd.xlane.f32.xlu0 %v80_v34  ;;  %129 = vadd.xlane.f32.xlu1 %v128_v35 }
  0x27   :  { %84 = vadd.xlane.f32.xlu0 %v83_v38  ;;  %132 = vadd.xlane.f32.xlu1 %v131_v39 }
  0x2b   :  { %87 = vadd.xlane.f32.xlu0 %v86_v42  ;;  %135 = vadd.xlane.f32.xlu1 %v134_v43 }
  0x2f   :  { %90 = vadd.xlane.f32.xlu0 %v89_v46  ;;  %138 = vadd.xlane.f32.xlu1 %v137_v47 }
  0x33   :  { %93 = vadd.xlane.f32.xlu0 %v92_v50  ;;  %141 = vadd.xlane.f32.xlu1 %v140_v51 }
  0x37   :  { %96 = vadd.xlane.f32.xlu0 %v95_v54  ;;  %144 = vadd.xlane.f32.xlu1 %v143_v55 }
  0x3b   :  { %99 = vadd.xlane.f32.xlu0 %v98_v58  ;;  %147 = vadd.xlane.f32.xlu1 %v146_v59 }
  0x3f   :  { %102 = vadd.xlane.f32.xlu0 %v101_v62  ;;  %150 = vadd.xlane.f32.xlu1 %v149_v63 }
  0x90   :  { %v58_v3 = vpop.xlane.xlu0 %57  ;;  %v61_v4 = vpop.xlane.xlu1 %60 }
  0x91   :  { %v153_v6 = vmul.f32 0.0625, %v58_v3  ;;  %v154_v7 = vmul.f32 0.0625, %v61_v4 }
  0x93   :  { %v1789_v10 = vsub.f32 %v1567_v0, %v153_v6  ;;  %v1792_v11 = vsub.f32 %v1572_v1, %v154_v7 }
  0x94   :  { %v106_v14 = vpop.xlane.xlu0 %105  ;;  %v109_v15 = vpop.xlane.xlu1 %108 }
  0x95   :  { %v169_v18 = vmul.f32 0.0625, %v106_v14  ;;  %v170_v19 = vmul.f32 0.0625, %v109_v15  ;;  %v217_v22 = vmul.f32 %v1789_v10, %v1789_v10  ;;  %v218_v23 = vmul.f32 %v1792_v11, %v1792_v11 }
  0x97   :  { %v1799_v26 = vsub.f32 %v1577_v2, %v169_v18  ;;  %v1802_v27 = vsub.f32 %v1586_v5, %v170_v19  ;;  %v249_v0 = vsel %vm55_vm0, %v217_v22, 0.0  ;;  %v252_v31 = vsel %vm55_vm0, %v218_v23, 0.0 }
  0x98   :  { %250 = vadd.xlane.f32.xlu0 %v249_v0  ;;  %v64_v1 = vpop.xlane.xlu0 %63  ;;  %v112_v30 = vpop.xlane.xlu1 %111 }
  0x99   :  { %v155_v34 = vmul.f32 0.0625, %v64_v1  ;;  %v171_v35 = vmul.f32 0.0625, %v112_v30  ;;  %v233_v38 = vmul.f32 %v1799_v26, %v1799_v26  ;;  %v234_v39 = vmul.f32 %v1802_v27, %v1802_v27 }
  0x9b   :  { %v1811_v2 = vsub.f32 %v1595_v8, %v155_v34  ;;  %v1814_v5 = vsub.f32 %v1600_v9, %v171_v35  ;;  %v297_v42 = vsel %vm55_vm0, %v233_v38, 0.0  ;;  %v300_v47 = vsel %vm55_vm0, %v234_v39, 0.0 }
  0x9c   :  { %253 = vadd.xlane.f32.xlu0 %v252_v31  ;;  %298 = vadd.xlane.f32.xlu1 %v297_v42  ;;  %v67_v43 = vpop.xlane.xlu0 %66  ;;  %v115_v46 = vpop.xlane.xlu1 %114 }
  0x9d   :  { %v156_v50 = vmul.f32 0.0625, %v67_v43  ;;  %v172_v51 = vmul.f32 0.0625, %v115_v46  ;;  %v219_v54 = vmul.f32 %v1811_v2, %v1811_v2  ;;  %v235_v8 = vmul.f32 %v1814_v5, %v1814_v5 }
  0x9f   :  { %v1823_v55 = vsub.f32 %v1609_v12, %v156_v50  ;;  %v1826_v9 = vsub.f32 %v1614_v13, %v172_v51  ;;  %v255_v58 = vsel %vm55_vm0, %v219_v54, 0.0  ;;  %v303_v63 = vsel %vm55_vm0, %v235_v8, 0.0 }
  0xa0   :  { %301 = vadd.xlane.f32.xlu1 %v300_v47  ;;  %256 = vadd.xlane.f32.xlu0 %v255_v58  ;;  %v70_v59 = vpop.xlane.xlu0 %69  ;;  %v118_v62 = vpop.xlane.xlu1 %117 }
  0xa1   :  { %v157_v3 = vmul.f32 0.0625, %v70_v59  ;;  %v173_v4 = vmul.f32 0.0625, %v118_v62  ;;  %v220_v6 = vmul.f32 %v1823_v55, %v1823_v55  ;;  %v236_v12 = vmul.f32 %v1826_v9, %v1826_v9 }
  0xa3   :  { %v1835_v7 = vsub.f32 %v1623_v16, %v157_v3  ;;  %v1838_v13 = vsub.f32 %v1628_v17, %v173_v4  ;;  %v258_v14 = vsel %vm55_vm0, %v220_v6, 0.0  ;;  %v306_v19 = vsel %vm55_vm0, %v236_v12, 0.0 }
  0xa4   :  { %304 = vadd.xlane.f32.xlu1 %v303_v63  ;;  %259 = vadd.xlane.f32.xlu0 %v258_v14  ;;  %v73_v15 = vpop.xlane.xlu0 %72  ;;  %v121_v18 = vpop.xlane.xlu1 %120 }
  0xa5   :  { %v158_v22 = vmul.f32 0.0625, %v73_v15  ;;  %v174_v23 = vmul.f32 0.0625, %v121_v18  ;;  %v221_v0 = vmul.f32 %v1835_v7, %v1835_v7  ;;  %v237_v16 = vmul.f32 %v1838_v13, %v1838_v13 }
  0xa7   :  { %v1847_v1 = vsub.f32 %v1637_v20, %v158_v22  ;;  %v1850_v17 = vsub.f32 %v1642_v21, %v174_v23  ;;  %v261_v30 = vsel %vm55_vm0, %v221_v0, 0.0  ;;  %v309_v35 = vsel %vm55_vm0, %v237_v16, 0.0 }
  0xa8   :  { %307 = vadd.xlane.f32.xlu1 %v306_v19  ;;  %262 = vadd.xlane.f32.xlu0 %v261_v30  ;;  %v76_v31 = vpop.xlane.xlu0 %75  ;;  %v124_v34 = vpop.xlane.xlu1 %123 }
  0xa9   :  { %v159_v38 = vmul.f32 0.0625, %v76_v31  ;;  %v175_v39 = vmul.f32 0.0625, %v124_v34  ;;  %v222_v42 = vmul.f32 %v1847_v1, %v1847_v1  ;;  %v238_v20 = vmul.f32 %v1850_v17, %v1850_v17 }
  0xab   :  { %v1859_v43 = vsub.f32 %v1651_v24, %v159_v38  ;;  %v1862_v21 = vsub.f32 %v1656_v25, %v175_v39  ;;  %v264_v46 = vsel %vm55_vm0, %v222_v42, 0.0  ;;  %v312_v51 = vsel %vm55_vm0, %v238_v20, 0.0 }
  0xac   :  { %310 = vadd.xlane.f32.xlu1 %v309_v35  ;;  %265 = vadd.xlane.f32.xlu0 %v264_v46  ;;  %v79_v47 = vpop.xlane.xlu0 %78  ;;  %v127_v50 = vpop.xlane.xlu1 %126 }
  0xad   :  { %v160_v54 = vmul.f32 0.0625, %v79_v47  ;;  %v176_v8 = vmul.f32 0.0625, %v127_v50  ;;  %v223_v58 = vmul.f32 %v1859_v43, %v1859_v43  ;;  %v239_v24 = vmul.f32 %v1862_v21, %v1862_v21  ;;  %v552_v47 = vld [vmem:[%s2422_s4 + $0x8] sm:$0xff] }
  0xaf   :  { %v1871_v59 = vsub.f32 %v1665_v28, %v160_v54  ;;  %v1874_v25 = vsub.f32 %v1670_v29, %v176_v8  ;;  %v267_v62 = vsel %vm55_vm0, %v223_v58, 0.0  ;;  %v315_v4 = vsel %vm55_vm0, %v239_v24, 0.0 }
  0xb0   :  { %313 = vadd.xlane.f32.xlu1 %v312_v51  ;;  %268 = vadd.xlane.f32.xlu0 %v267_v62  ;;  %v82_v63 = vpop.xlane.xlu0 %81  ;;  %v130_v3 = vpop.xlane.xlu1 %129 }
  0xb1   :  { %v161_v6 = vmul.f32 0.0625, %v82_v63  ;;  %v177_v12 = vmul.f32 0.0625, %v130_v3  ;;  %v224_v14 = vmul.f32 %v1871_v59, %v1871_v59  ;;  %v240_v28 = vmul.f32 %v1874_v25, %v1874_v25 }
  0xb3   :  { %v1883_v15 = vsub.f32 %v1679_v32, %v161_v6  ;;  %v1886_v29 = vsub.f32 %v1684_v33, %v177_v12  ;;  %v270_v18 = vsel %vm55_vm0, %v224_v14, 0.0  ;;  %v318_v23 = vsel %vm55_vm0, %v240_v28, 0.0 }
  0xb4   :  { %316 = vadd.xlane.f32.xlu1 %v315_v4  ;;  %271 = vadd.xlane.f32.xlu0 %v270_v18  ;;  %v85_v19 = vpop.xlane.xlu0 %84  ;;  %v133_v22 = vpop.xlane.xlu1 %132 }
  0xb5   :  { %v162_v0 = vmul.f32 0.0625, %v85_v19  ;;  %v178_v16 = vmul.f32 0.0625, %v133_v22  ;;  %v225_v30 = vmul.f32 %v1883_v15, %v1883_v15  ;;  %v241_v32 = vmul.f32 %v1886_v29, %v1886_v29 }
  0xb7   :  { %v1895_v31 = vsub.f32 %v1693_v36, %v162_v0  ;;  %v1898_v33 = vsub.f32 %v1698_v37, %v178_v16  ;;  %v273_v34 = vsel %vm55_vm0, %v225_v30, 0.0  ;;  %v321_v39 = vsel %vm55_vm0, %v241_v32, 0.0  ;;  %v551_v37 = vld [vmem:[%s2422_s4] sm:$0xff] }
  0xb8   :  { %319 = vadd.xlane.f32.xlu1 %v318_v23  ;;  %274 = vadd.xlane.f32.xlu0 %v273_v34  ;;  %v88_v35 = vpop.xlane.xlu0 %87  ;;  %v136_v38 = vpop.xlane.xlu1 %135  ;;  %v1455_v50 = vpack.c.bf16 %v552_v47, %v551_v37  ;;  %v1528_v30 = vmov 0  }
  0xb9   :  { %v163_v42 = vmul.f32 0.0625, %v88_v35  ;;  %v179_v20 = vmul.f32 0.0625, %v136_v38  ;;  %v226_v46 = vmul.f32 %v1895_v31, %v1895_v31  ;;  %v242_v36 = vmul.f32 %v1898_v33, %v1898_v33  ;;  %1463 = vset.pattern.permute.xlu1 %v1528_v30  ;;  %1462 = vset.pattern.permute.xlu0 %v1528_v30  ;;  %v884_v30 = vld [vmem:[%s2423_s1 + $0x18] sm:$0xff] }
  0xba   :  { %1456 = vmatprep.subr.bf16.mxu0 %v1455_v50  ;;  %1459 = vmatprep.subr.bf16.mxu1 %v1455_v50 }
  0xbb   :  { %v1913_v51 = vsub.f32 %v1707_v40, %v163_v42  ;;  %v1916_v54 = vsub.f32 %v1712_v41, %v179_v20  ;;  %v276_v8 = vsel %vm55_vm0, %v226_v46, 0.0  ;;  %v324_v62 = vsel %vm55_vm0, %v242_v36, 0.0  ;;  %1458 = vmatpush3.bf16.msra.mxu0 %v1455_v50  ;;  %1460 = vmatpush3.bf16.msra.mxu1 %v1455_v50 }
  0xbc   :  { %322 = vadd.xlane.f32.xlu1 %v321_v39  ;;  %277 = vadd.xlane.f32.xlu0 %v276_v8  ;;  %v91_v58 = vpop.xlane.xlu0 %90  ;;  %v139_v24 = vpop.xlane.xlu1 %138 }
  0xbd   :  { %v164_v63 = vmul.f32 0.0625, %v91_v58  ;;  %v180_v3 = vmul.f32 0.0625, %v139_v24  ;;  %v227_v4 = vmul.f32 %v1913_v51, %v1913_v51  ;;  %v243_v40 = vmul.f32 %v1916_v54, %v1916_v54 }
  0xbf   :  { %v1925_v41 = vsub.f32 %v1721_v44, %v164_v63  ;;  %v1928_v6 = vsub.f32 %v1726_v45, %v180_v3  ;;  %v279_v12 = vsel %vm55_vm0, %v227_v4, 0.0  ;;  %v327_v18 = vsel %vm55_vm0, %v243_v40, 0.0 }
  0xc0   :  { %325 = vadd.xlane.f32.xlu1 %v324_v62  ;;  %280 = vadd.xlane.f32.xlu0 %v279_v12  ;;  %v94_v14 = vpop.xlane.xlu0 %93  ;;  %v142_v28 = vpop.xlane.xlu1 %141 }
  0xc1   :  { %v165_v19 = vmul.f32 0.0625, %v94_v14  ;;  %v181_v22 = vmul.f32 0.0625, %v142_v28  ;;  %v228_v23 = vmul.f32 %v1925_v41, %v1925_v41  ;;  %v244_v44 = vmul.f32 %v1928_v6, %v1928_v6 }
  0xc3   :  { %v1937_v0 = vsub.f32 %v1735_v48, %v165_v19  ;;  %v1940_v45 = vsub.f32 %v1740_v49, %v181_v22  ;;  %v282_v16 = vsel %vm55_vm0, %v228_v23, 0.0  ;;  %v330_v35 = vsel %vm55_vm0, %v244_v44, 0.0 }
  0xc4   :  { %328 = vadd.xlane.f32.xlu1 %v327_v18  ;;  %283 = vadd.xlane.f32.xlu0 %v282_v16  ;;  %v97_v32 = vpop.xlane.xlu0 %96  ;;  %v145_v34 = vpop.xlane.xlu1 %144  ;;  %v883_v16 = vld [vmem:[%s2423_s1 + $0x10] sm:$0xff] }
  0xc5   :  { %v166_v38 = vmul.f32 0.0625, %v97_v32  ;;  %v182_v39 = vmul.f32 0.0625, %v145_v34  ;;  %v229_v48 = vmul.f32 %v1937_v0, %v1937_v0  ;;  %v245_v49 = vmul.f32 %v1940_v45, %v1940_v45  ;;  %v881_v32 = vld [vmem:[%s2423_s1] sm:$0xff] }
  0xc6   :  { %v885_v34 = vld [vmem:[%s2423_s1 + $0x20] sm:$0xff] }
  0xc7   :  { %v1949_v42 = vsub.f32 %v1749_v52, %v166_v38  ;;  %v1952_v20 = vsub.f32 %v1754_v53, %v182_v39  ;;  %v285_v46 = vsel %vm55_vm0, %v229_v48, 0.0  ;;  %v333_v47 = vsel %vm55_vm0, %v245_v49, 0.0  ;;  %v886_v38 = vld [vmem:[%s2423_s1 + $0x28] sm:$0xff]  ;;  %v892_v39 = vld [vmem:[%s2423_s1 + $0x58] sm:$0xff]  ;;  %v887_v48 = vld [vmem:[%s2423_s1 + $0x30] sm:$0xff] }
  0xc8   :  { %331 = vadd.xlane.f32.xlu1 %v330_v35  ;;  %286 = vadd.xlane.f32.xlu0 %v285_v46  ;;  %v100_v36 = vpop.xlane.xlu0 %99  ;;  %v148_v37 = vpop.xlane.xlu1 %147  ;;  %v890_v35 = vld [vmem:[%s2423_s1 + $0x48] sm:$0xff]  ;;  %v888_v46 = vld [vmem:[%s2423_s1 + $0x38] sm:$0xff] }
  0xc9   :  { %v167_v50 = vmul.f32 0.0625, %v100_v36  ;;  %v183_v8 = vmul.f32 0.0625, %v148_v37  ;;  %v230_v58 = vmul.f32 %v1949_v42, %v1949_v42  ;;  %v246_v52 = vmul.f32 %v1952_v20, %v1952_v20  ;;  %v894_v49 = vld [vmem:[%s2423_s1 + $0x68] sm:$0xff]  ;;  %v896_v36 = vld [vmem:[%s2423_s1 + $0x78] sm:$0xff]  ;;  %v889_v37 = vld [vmem:[%s2423_s1 + $0x40] sm:$0xff] }
  0xcb   :  { %v1961_v24 = vsub.f32 %v1763_v56, %v167_v50  ;;  %v1964_v53 = vsub.f32 %v1768_v57, %v183_v8  ;;  %v288_v62 = vsel %vm55_vm0, %v230_v58, 0.0  ;;  %v336_v4 = vsel %vm55_vm0, %v246_v52, 0.0  ;;  %v891_v50 = vld [vmem:[%s2423_s1 + $0x50] sm:$0xff]  ;;  %v900_v8 = vld [vmem:[%s2423_s1 + $0x98] sm:$0xff]  ;;  %v893_v58 = vld [vmem:[%s2423_s1 + $0x60] sm:$0xff] }
  0xcc   :  { %334 = vadd.xlane.f32.xlu1 %v333_v47  ;;  %289 = vadd.xlane.f32.xlu0 %v288_v62  ;;  %v103_v63 = vpop.xlane.xlu0 %102  ;;  %v151_v3 = vpop.xlane.xlu1 %150  ;;  %v898_v47 = vld [vmem:[%s2423_s1 + $0x88] sm:$0xff]  ;;  %v895_v62 = vld [vmem:[%s2423_s1 + $0x70] sm:$0xff] }
  0xcd   :  { %v168_v40 = vmul.f32 0.0625, %v103_v63  ;;  %v184_v12 = vmul.f32 0.0625, %v151_v3  ;;  %v231_v14 = vmul.f32 %v1961_v24, %v1961_v24  ;;  %v247_v56 = vmul.f32 %v1964_v53, %v1964_v53  ;;  %v902_v52 = vld [vmem:[%s2423_s1 + $0xa8] sm:$0xff]  ;;  %v904_v63 = vld [vmem:[%s2423_s1 + $0xb8] sm:$0xff]  ;;  %v897_v3 = vld [vmem:[%s2423_s1 + $0x80] sm:$0xff] }
  0xcf   :  { %v1973_v28 = vsub.f32 %v1777_v60, %v168_v40  ;;  %v1976_v57 = vsub.f32 %v1782_v61, %v184_v12  ;;  %v291_v18 = vsel %vm55_vm0, %v231_v14, 0.0  ;;  %v339_v19 = vsel %vm55_vm0, %v247_v56, 0.0  ;;  %v882_v61 = vld [vmem:[%s2423_s1 + $0x8] sm:$0xff]  ;;  %v899_v40 = vld [vmem:[%s2423_s1 + $0x90] sm:$0xff]  ;;  %v908_v12 = vld [vmem:[%s2423_s1 + $0xd8] sm:$0xff] }
  0xd0   :  { %337 = vadd.xlane.f32.xlu1 %v336_v4  ;;  %292 = vadd.xlane.f32.xlu0 %v291_v18  ;;  %v906_v4 = vld [vmem:[%s2423_s1 + $0xc8] sm:$0xff]  ;;  %v901_v14 = vld [vmem:[%s2423_s1 + $0xa0] sm:$0xff]  ;;  %v903_v18 = vld [vmem:[%s2423_s1 + $0xb0] sm:$0xff] }
  0xd1   :  { %v232_v22 = vmul.f32 %v1973_v28, %v1973_v28  ;;  %v248_v23 = vmul.f32 %v1976_v57, %v1976_v57  ;;  %v910_v56 = vld [vmem:[%s2423_s1 + $0xe8] sm:$0xff] }
  0xd3   :  { %v294_v44 = vsel %vm55_vm0, %v232_v22, 0.0  ;;  %v342_v60 = vsel %vm55_vm0, %v248_v23, 0.0  ;;  %v905_v22 = vld [vmem:[%s2423_s1 + $0xc0] sm:$0xff] }
  0xd4   :  { %340 = vadd.xlane.f32.xlu1 %v339_v19  ;;  %295 = vadd.xlane.f32.xlu0 %v294_v44  ;;  %v912_v19 = vld [vmem:[%s2423_s1 + $0xf8] sm:$0xff] }
  0xd8   :  { %343 = vadd.xlane.f32.xlu1 %v342_v60  ;;  %v907_v60 = vld [vmem:[%s2423_s1 + $0xd0] sm:$0xff] }
  0xe9   :  { %920 = vperm.xlu1 %1463, %v882_v61  }
  0xea   :  { %915 = vperm.xlu0 %1462, %v881_v32  }
  0xed   :  { %925 = vperm.xlu1 %1463, %v883_v16  }
  0xee   :  { %960 = vperm.xlu0 %1462, %v890_v35   ;;  %v909_v35 = vld [vmem:[%s2423_s1 + $0xe0] sm:$0xff] }
  0xf1   :  { %930 = vperm.xlu1 %1463, %v884_v30  }
  0xf2   :  { %970 = vperm.xlu0 %1462, %v892_v39  }
  0xf5   :  { %935 = vperm.xlu1 %1463, %v885_v34  }
  0xf6   :  { %980 = vperm.xlu0 %1462, %v894_v49  }
  0xf9   :  { %940 = vperm.xlu1 %1463, %v886_v38  }
  0xfa   :  { %990 = vperm.xlu0 %1462, %v896_v36  }
  0xfd   :  { %945 = vperm.xlu1 %1463, %v887_v48  }
  0xfe   :  { %1000 = vperm.xlu0 %1462, %v898_v47  }
 0x101   :  { %950 = vperm.xlu1 %1463, %v888_v46  }
 0x102   :  { %1010 = vperm.xlu0 %1462, %v900_v8  }
 0x105   :  { %955 = vperm.xlu1 %1463, %v889_v37   ;;  %v911_v37 = vld [vmem:[%s2423_s1 + $0xf0] sm:$0xff] }
 0x106   :  { %1020 = vperm.xlu0 %1462, %v902_v52  }
 0x109   :  { %965 = vperm.xlu1 %1463, %v891_v50  }
 0x10a   :  { %1030 = vperm.xlu0 %1462, %v904_v63  }
 0x10d   :  { %975 = vperm.xlu1 %1463, %v893_v58  }
 0x10e   :  { %1040 = vperm.xlu0 %1462, %v906_v4  }
 0x111   :  { %985 = vperm.xlu1 %1463, %v895_v62  }
 0x112   :  { %1050 = vperm.xlu0 %1462, %v908_v12  }
 0x115   :  { %995 = vperm.xlu1 %1463, %v897_v3  }
 0x116   :  { %1060 = vperm.xlu0 %1462, %v910_v56  }
 0x119   :  { %1005 = vperm.xlu1 %1463, %v899_v40   ;;  %v2085_v40 = vld [vmem:[%s2424_s2] ss:$0 sm:$0xff] }
 0x11a   :  { %1070 = vperm.xlu0 %1462, %v912_v19  }
 0x11d   :  { %1015 = vperm.xlu1 %1463, %v901_v14  }
 0x121   :  { %1025 = vperm.xlu1 %1463, %v903_v18  }
 0x125   :  { %v251_v23 = vpop.xlane.xlu0 %250  ;;  %1035 = vperm.xlu1 %1463, %v905_v22   ;;  %v2091_v22 = vld [vmem:[%s2425_s3] ss:$0 sm:$0xff] }
 0x126   :  { %v345_v44 = vmul.f32 0.0625, %v251_v23 }
 0x128   :  { %v377_v61 = vadd.f32 1e-05, %v345_v44 }
 0x129   :  { %v299_v16 = vpop.xlane.xlu1 %298  ;;  %v254_v30 = vpop.xlane.xlu0 %253  ;;  %1045 = vperm.xlu1 %1463, %v907_v60  }
 0x12a   :  { %1464 = vrsqrt.f32 %v377_v61  ;;  %v361_v32 = vmul.f32 0.0625, %v299_v16  ;;  %v346_v34 = vmul.f32 0.0625, %v254_v30 }
 0x12c   :  { %v393_v38 = vadd.f32 1e-05, %v361_v32  ;;  %v378_v39 = vadd.f32 1e-05, %v346_v34 }
 0x12d   :  { %v302_v48 = vpop.xlane.xlu1 %301  ;;  %v257_v49 = vpop.xlane.xlu0 %256  ;;  %1055 = vperm.xlu1 %1463, %v909_v35  }
 0x12e   :  { %1466 = vrsqrt.f32 %v393_v38  ;;  %v362_v46 = vmul.f32 0.0625, %v302_v48  ;;  %v347_v36 = vmul.f32 0.0625, %v257_v49 }
 0x12f   :  { %1468 = vrsqrt.f32 %v378_v39 }
 0x130   :  { %v394_v47 = vadd.f32 1e-05, %v362_v46  ;;  %v379_v50 = vadd.f32 1e-05, %v347_v36 }
 0x131   :  { %v305_v8 = vpop.xlane.xlu1 %304  ;;  %v260_v58 = vpop.xlane.xlu0 %259  ;;  %1065 = vperm.xlu1 %1463, %v911_v37  }
 0x132   :  { %1470 = vrsqrt.f32 %v394_v47  ;;  %v363_v52 = vmul.f32 0.0625, %v305_v8  ;;  %v348_v62 = vmul.f32 0.0625, %v260_v58 }
 0x133   :  { %1472 = vrsqrt.f32 %v379_v50 }
 0x134   :  { %v1465_v63 = vpop.eup %1464  ;;  %v395_v3 = vadd.f32 1e-05, %v363_v52  ;;  %v380_v4 = vadd.f32 1e-05, %v348_v62 }
 0x135   :  { %v308_v12 = vpop.xlane.xlu1 %307  ;;  %v263_v14 = vpop.xlane.xlu0 %262  ;;  %v441_v56 = vmul.f32 %v1465_v63, %v1789_v10 }
 0x136   :  { %1474 = vrsqrt.f32 %v395_v3  ;;  %v364_v18 = vmul.f32 0.0625, %v308_v12  ;;  %v349_v19 = vmul.f32 0.0625, %v263_v14 }
 0x137   :  { %1476 = vrsqrt.f32 %v380_v4  ;;  %v480_v23 = vmul.f32 %v2085_v40, %v441_v56 }
 0x138   :  { %v1467_v44 = vpop.eup %1466  ;;  %v396_v60 = vadd.f32 1e-05, %v364_v18  ;;  %v381_v61 = vadd.f32 1e-05, %v349_v19 }
 0x139   :  { %v1469_v16 = vpop.eup %1468  ;;  %v311_v30 = vpop.xlane.xlu1 %310  ;;  %v519_v34 = vadd.f32 %v2091_v22, %v480_v23  ;;  %v457_v10 = vmul.f32 %v1467_v44, %v1799_v26 }
 0x13a   :  { %v266_v32 = vpop.xlane.xlu0 %265  ;;  %1478 = vrsqrt.f32 %v396_v60  ;;  %v365_v35 = vmul.f32 0.0625, %v311_v30  ;;  %v442_v39 = vmul.f32 %v1469_v16, %v1792_v11 }
 0x13b   :  { %v350_v38 = vmul.f32 0.0625, %v266_v32  ;;  %1480 = vrsqrt.f32 %v381_v61  ;;  %1407 = vmatprep.mubr.msk.f32.mxu0 %vm55_vm0, %v519_v34  ;;  %v496_v48 = vmul.f32 %v2085_v40, %v457_v10 }
 0x13c   :  { %v1471_v49 = vpop.eup %1470  ;;  %v397_v46 = vadd.f32 1e-05, %v365_v35  ;;  %v481_v37 = vmul.f32 %v2085_v40, %v442_v39 }
 0x13d   :  { %v382_v36 = vadd.f32 1e-05, %v350_v38  ;;  %v1473_v47 = vpop.eup %1472  ;;  %v314_v50 = vpop.xlane.xlu1 %313  ;;  %v535_v26 = vadd.f32 %v2091_v22, %v496_v48  ;;  %v458_v58 = vmul.f32 %v1471_v49, %v1802_v27 }
 0x13e   :  { %v269_v8 = vpop.xlane.xlu0 %268  ;;  %1482 = vrsqrt.f32 %v397_v46  ;;  %v366_v52 = vmul.f32 0.0625, %v314_v50  ;;  %v520_v62 = vadd.f32 %v2091_v22, %v481_v37  ;;  %v443_v63 = vmul.f32 %v1473_v47, %v1811_v2 }
 0x13f   :  { %v351_v11 = vmul.f32 0.0625, %v269_v8  ;;  %1484 = vrsqrt.f32 %v382_v36  ;;  %1431 = vmatprep.mubr.msk.f32.mxu1 %vm55_vm0, %v535_v26  ;;  %v497_v3 = vmul.f32 %v2085_v40, %v458_v58 }
 0x140   :  { %v1475_v4 = vpop.eup %1474  ;;  %v398_v12 = vadd.f32 1e-05, %v366_v52  ;;  %1408 = vmatmul.mubr.msk.f32.vlgmr.msra.gmra.mrb[0].mxu0 %vm55_vm0, %v520_v62  ;;  %v482_v19 = vmul.f32 %v2085_v40, %v443_v63 }
 0x141   :  { %v383_v14 = vadd.f32 1e-05, %v351_v11  ;;  %v1477_v56 = vpop.eup %1476  ;;  %v317_v18 = vpop.xlane.xlu1 %316  ;;  %v536_v23 = vadd.f32 %v2091_v22, %v497_v3  ;;  %v459_v44 = vmul.f32 %v1475_v4, %v1814_v5 }
 0x142   :  { %v272_v27 = vpop.xlane.xlu0 %271  ;;  %1486 = vrsqrt.f32 %v398_v12  ;;  %v367_v60 = vmul.f32 0.0625, %v317_v18  ;;  %v444_v2 = vmul.f32 %v1477_v56, %v1823_v55  ;;  %v521_v16 = vadd.f32 %v2091_v22, %v482_v19 }
 0x143   :  { %v352_v61 = vmul.f32 0.0625, %v272_v27  ;;  %1488 = vrsqrt.f32 %v383_v14  ;;  %1432 = vmatmul.mubr.msk.f32.vlgmr.msra.gmra.mrb[0].mxu1 %vm55_vm0, %v536_v23  ;;  %v498_v30 = vmul.f32 %v2085_v40, %v459_v44 }
 0x144   :  { %v1479_v32 = vpop.eup %1478  ;;  %v399_v34 = vadd.f32 1e-05, %v367_v60  ;;  %v483_v35 = vmul.f32 %v2085_v40, %v444_v2  ;;  %1410 = vmatprep.mubr.msk.f32.mxu0 %vm55_vm0, %v521_v16 }
 0x145   :  { %v384_v10 = vadd.f32 1e-05, %v352_v61  ;;  %v1481_v38 = vpop.eup %1480  ;;  %v320_v5 = vpop.xlane.xlu1 %319  ;;  %v537_v48 = vadd.f32 %v2091_v22, %v498_v30  ;;  %v460_v55 = vmul.f32 %v1479_v32, %v1826_v9 }
 0x146   :  { %v275_v39 = vpop.xlane.xlu0 %274  ;;  %1490 = vrsqrt.f32 %v399_v34  ;;  %v368_v49 = vmul.f32 0.0625, %v320_v5  ;;  %v522_v36 = vadd.f32 %v2091_v22, %v483_v35  ;;  %v445_v37 = vmul.f32 %v1481_v38, %v1835_v7 }
 0x147   :  { %v353_v46 = vmul.f32 0.0625, %v275_v39  ;;  %1492 = vrsqrt.f32 %v384_v10  ;;  %1434 = vmatprep.mubr.msk.f32.mxu1 %vm55_vm0, %v537_v48  ;;  %v499_v47 = vmul.f32 %v2085_v40, %v460_v55 }
 0x148   :  { %v1483_v50 = vpop.eup %1482  ;;  %v400_v8 = vadd.f32 1e-05, %v368_v49  ;;  %1411 = vmatmul.mubr.msk.f32.gmra.mrb[2].mxu0 %vm55_vm0, %v522_v36  ;;  %v484_v11 = vmul.f32 %v2085_v40, %v445_v37 }
 0x149   :  { %v385_v26 = vadd.f32 1e-05, %v353_v46  ;;  %v1485_v58 = vpop.eup %1484  ;;  %v323_v52 = vpop.xlane.xlu1 %322  ;;  %v538_v62 = vadd.f32 %v2091_v22, %v499_v47  ;;  %v461_v63 = vmul.f32 %v1483_v50, %v1838_v13 }
 0x14a   :  { %v278_v9 = vpop.xlane.xlu0 %277  ;;  %1494 = vrsqrt.f32 %v400_v8  ;;  %v369_v3 = vmul.f32 0.0625, %v323_v52  ;;  %v446_v7 = vmul.f32 %v1485_v58, %v1847_v1  ;;  %v523_v12 = vadd.f32 %v2091_v22, %v484_v11 }
 0x14b   :  { %v354_v4 = vmul.f32 0.0625, %v278_v9  ;;  %1496 = vrsqrt.f32 %v385_v26  ;;  %1435 = vmatmul.mubr.msk.f32.gmra.mrb[2].mxu1 %vm55_vm0, %v538_v62  ;;  %v500_v14 = vmul.f32 %v2085_v40, %v461_v63 }
 0x14c   :  { %v1487_v56 = vpop.eup %1486  ;;  %v401_v18 = vadd.f32 1e-05, %v369_v3  ;;  %v485_v19 = vmul.f32 %v2085_v40, %v446_v7  ;;  %1413 = vmatprep.mubr.msk.f32.mxu0 %vm55_vm0, %v523_v12 }
 0x14d   :  { %v386_v27 = vadd.f32 1e-05, %v354_v4  ;;  %v1489_v23 = vpop.eup %1488  ;;  %v326_v13 = vpop.xlane.xlu1 %325  ;;  %v539_v60 = vadd.f32 %v2091_v22, %v500_v14  ;;  %v462_v1 = vmul.f32 %v1487_v56, %v1850_v17 }
 0x14e   :  { %v281_v44 = vpop.xlane.xlu0 %280  ;;  %1498 = vrsqrt.f32 %v401_v18  ;;  %v370_v61 = vmul.f32 0.0625, %v326_v13  ;;  %v524_v16 = vadd.f32 %v2091_v22, %v485_v19  ;;  %v447_v30 = vmul.f32 %v1489_v23, %v1859_v43 }
 0x14f   :  { %v355_v2 = vmul.f32 0.0625, %v281_v44  ;;  %1500 = vrsqrt.f32 %v386_v27  ;;  %1437 = vmatprep.mubr.msk.f32.mxu1 %vm55_vm0, %v539_v60  ;;  %v501_v32 = vmul.f32 %v2085_v40, %v462_v1 }
 0x150   :  { %v1491_v34 = vpop.eup %1490  ;;  %v402_v10 = vadd.f32 1e-05, %v370_v61  ;;  %1414 = vmatmul.mubr.msk.f32.gmra.mrb[4].mxu0 %vm55_vm0, %v524_v16  ;;  %v486_v39 = vmul.f32 %v2085_v40, %v447_v30 }
 0x151   :  { %v387_v35 = vadd.f32 1e-05, %v355_v2  ;;  %v1493_v38 = vpop.eup %1492  ;;  %v329_v5 = vpop.xlane.xlu1 %328  ;;  %v540_v48 = vadd.f32 %v2091_v22, %v501_v32  ;;  %v463_v55 = vmul.f32 %v1491_v34, %v1862_v21 }
 0x152   :  { %v284_v17 = vpop.xlane.xlu0 %283  ;;  %1502 = vrsqrt.f32 %v402_v10  ;;  %v371_v49 = vmul.f32 0.0625, %v329_v5  ;;  %v448_v43 = vmul.f32 %v1493_v38, %v1871_v59  ;;  %v525_v36 = vadd.f32 %v2091_v22, %v486_v39 }
 0x153   :  { %v356_v46 = vmul.f32 0.0625, %v284_v17  ;;  %1504 = vrsqrt.f32 %v387_v35  ;;  %1438 = vmatmul.mubr.msk.f32.gmra.mrb[4].mxu1 %vm55_vm0, %v540_v48  ;;  %v502_v37 = vmul.f32 %v2085_v40, %v463_v55 }
 0x154   :  { %v1495_v47 = vpop.eup %1494  ;;  %v403_v50 = vadd.f32 1e-05, %v371_v49  ;;  %v487_v26 = vmul.f32 %v2085_v40, %v448_v43  ;;  %1416 = vmatprep.mubr.msk.f32.mxu0 %vm55_vm0, %v525_v36 }
 0x155   :  { %v388_v8 = vadd.f32 1e-05, %v356_v46  ;;  %v1497_v58 = vpop.eup %1496  ;;  %v332_v21 = vpop.xlane.xlu1 %331  ;;  %v541_v9 = vadd.f32 %v2091_v22, %v502_v37  ;;  %v464_v59 = vmul.f32 %v1495_v47, %v1874_v25 }
 0x156   :  { %v287_v52 = vpop.xlane.xlu0 %286  ;;  %1506 = vrsqrt.f32 %v403_v50  ;;  %v372_v11 = vmul.f32 0.0625, %v332_v21  ;;  %v526_v63 = vadd.f32 %v2091_v22, %v487_v26  ;;  %v449_v3 = vmul.f32 %v1497_v58, %v1883_v15 }
 0x157   :  { %v357_v62 = vmul.f32 0.0625, %v287_v52  ;;  %1508 = vrsqrt.f32 %v388_v8  ;;  %1440 = vmatprep.mubr.msk.f32.mxu1 %vm55_vm0, %v541_v9  ;;  %v503_v4 = vmul.f32 %v2085_v40, %v464_v59 }
 0x158   :  { %v1499_v7 = vpop.eup %1498  ;;  %v404_v12 = vadd.f32 1e-05, %v372_v11  ;;  %1417 = vmatmul.mubr.msk.f32.gmra.mrb[6].mxu0 %vm55_vm0, %v526_v63  ;;  %v488_v27 = vmul.f32 %v2085_v40, %v449_v3 }
 0x159   :  { %v389_v14 = vadd.f32 1e-05, %v357_v62  ;;  %v1501_v56 = vpop.eup %1500  ;;  %v335_v18 = vpop.xlane.xlu1 %334  ;;  %v542_v19 = vadd.f32 %v2091_v22, %v503_v4  ;;  %v465_v23 = vmul.f32 %v1499_v7, %v1886_v29 }
 0x15a   :  { %v290_v25 = vpop.xlane.xlu0 %289  ;;  %1510 = vrsqrt.f32 %v404_v12  ;;  %v373_v13 = vmul.f32 0.0625, %v335_v18  ;;  %v450_v15 = vmul.f32 %v1501_v56, %v1895_v31  ;;  %v527_v60 = vadd.f32 %v2091_v22, %v488_v27 }
 0x15b   :  { %v358_v44 = vmul.f32 0.0625, %v290_v25  ;;  %1512 = vrsqrt.f32 %v389_v14  ;;  %1441 = vmatmul.mubr.msk.f32.gmra.mrb[6].mxu1 %vm55_vm0, %v542_v19  ;;  %v504_v1 = vmul.f32 %v2085_v40, %v465_v23 }
 0x15c   :  { %v1503_v61 = vpop.eup %1502  ;;  %v405_v2 = vadd.f32 1e-05, %v373_v13  ;;  %v489_v30 = vmul.f32 %v2085_v40, %v450_v15  ;;  %1419 = vmatprep.mubr.msk.f32.mxu0 %vm55_vm0, %v527_v60 }
 0x15d   :  { %v390_v16 = vadd.f32 1e-05, %v358_v44  ;;  %v1505_v32 = vpop.eup %1504  ;;  %v338_v29 = vpop.xlane.xlu1 %337  ;;  %v543_v10 = vadd.f32 %v2091_v22, %v504_v1  ;;  %v466_v31 = vmul.f32 %v1503_v61, %v1898_v33 }
 0x15e   :  { %v293_v34 = vpop.xlane.xlu0 %292  ;;  %1514 = vrsqrt.f32 %v405_v2  ;;  %v374_v35 = vmul.f32 0.0625, %v338_v29  ;;  %v528_v5 = vadd.f32 %v2091_v22, %v489_v30  ;;  %v451_v17 = vmul.f32 %v1505_v32, %v1913_v51 }
 0x15f   :  { %v359_v38 = vmul.f32 0.0625, %v293_v34  ;;  %1516 = vrsqrt.f32 %v390_v16  ;;  %1443 = vmatprep.mubr.msk.f32.mxu1 %vm55_vm0, %v543_v10  ;;  %v505_v39 = vmul.f32 %v2085_v40, %v466_v31 }
 0x160   :  { %v1507_v48 = vpop.eup %1506  ;;  %v406_v55 = vadd.f32 1e-05, %v374_v35  ;;  %1420 = vmatmul.mubr.msk.f32.gmra.mrb[8].mxu0 %vm55_vm0, %v528_v5  ;;  %v490_v36 = vmul.f32 %v2085_v40, %v451_v17 }
 0x161   :  { %v391_v49 = vadd.f32 1e-05, %v359_v38  ;;  %v1509_v46 = vpop.eup %1508  ;;  %v341_v43 = vpop.xlane.xlu1 %340  ;;  %v544_v37 = vadd.f32 %v2091_v22, %v505_v39  ;;  %v467_v47 = vmul.f32 %v1507_v48, %v1916_v54 }
 0x162   :  { %v296_v33 = vpop.xlane.xlu0 %295  ;;  %1518 = vrsqrt.f32 %v406_v55  ;;  %v375_v50 = vmul.f32 0.0625, %v341_v43  ;;  %v452_v51 = vmul.f32 %v1509_v46, %v1925_v41  ;;  %v529_v26 = vadd.f32 %v2091_v22, %v490_v36 }
 0x163   :  { %v360_v8 = vmul.f32 0.0625, %v296_v33  ;;  %1520 = vrsqrt.f32 %v391_v49  ;;  %1444 = vmatmul.mubr.msk.f32.gmra.mrb[8].mxu1 %vm55_vm0, %v544_v37  ;;  %v506_v58 = vmul.f32 %v2085_v40, %v467_v47  ;;  %v2243_v47 = vld [vmem:[%s2426_s5] ss:$0 sm:$0xff] }
 0x164   :  { %v1511_v21 = vpop.eup %1510  ;;  %v407_v52 = vadd.f32 1e-05, %v375_v50  ;;  %v491_v59 = vmul.f32 %v2085_v40, %v452_v51  ;;  %1422 = vmatprep.mubr.msk.f32.mxu0 %vm55_vm0, %v529_v26 }
 0x165   :  { %v392_v9 = vadd.f32 1e-05, %v360_v8  ;;  %v1513_v11 = vpop.eup %1512  ;;  %v344_v54 = vpop.xlane.xlu1 %343  ;;  %v545_v62 = vadd.f32 %v2091_v22, %v506_v58  ;;  %v468_v41 = vmul.f32 %v1511_v21, %v1928_v6 }
 0x166   :  { %1522 = vrsqrt.f32 %v407_v52  ;;  %v376_v63 = vmul.f32 0.0625, %v344_v54  ;;  %v530_v3 = vadd.f32 %v2091_v22, %v491_v59  ;;  %v453_v4 = vmul.f32 %v1513_v11, %v1937_v0 }
 0x167   :  { %1524 = vrsqrt.f32 %v392_v9  ;;  %1446 = vmatprep.mubr.msk.f32.mxu1 %vm55_vm0, %v545_v62  ;;  %v507_v7 = vmul.f32 %v2085_v40, %v468_v41 }
 0x168   :  { %v1515_v12 = vpop.eup %1514  ;;  %v408_v14 = vadd.f32 1e-05, %v376_v63  ;;  %1423 = vmatmul.mubr.msk.f32.gmra.mrb[10].mxu0 %vm55_vm0, %v530_v3  ;;  %v492_v56 = vmul.f32 %v2085_v40, %v453_v4 }
 0x169   :  { %v1517_v18 = vpop.eup %1516  ;;  %v546_v6 = vadd.f32 %v2091_v22, %v507_v7  ;;  %v469_v25 = vmul.f32 %v1515_v12, %v1940_v45  ;;  %v921_v5 = vpop.permute.xlu1 %920 }
 0x16a   :  { %1526 = vrsqrt.f32 %v408_v14  ;;  %v531_v27 = vadd.f32 %v2091_v22, %v492_v56  ;;  %v454_v0 = vmul.f32 %v1517_v18, %v1949_v42  ;;  %v916_v49 = vpop.permute.xlu0 %915 }
 0x16b   :  { %1447 = vmatmul.mubr.msk.f32.gmra.mrb[10].mxu1 %vm55_vm0, %v546_v6  ;;  %v508_v19 = vmul.f32 %v2085_v40, %v469_v25 }
 0x16c   :  { %v1519_v23 = vpop.eup %1518  ;;  %1425 = vmatprep.mubr.msk.f32.mxu0 %vm55_vm0, %v531_v27  ;;  %v493_v13 = vmul.f32 %v2085_v40, %v454_v0 }
 0x16d   :  { %v1521_v44 = vpop.eup %1520  ;;  %v547_v15 = vadd.f32 %v2091_v22, %v508_v19  ;;  %v470_v60 = vmul.f32 %v1519_v23, %v1952_v20  ;;  %v926_v17 = vpop.permute.xlu1 %925 }
 0x16e   :  { %v532_v45 = vadd.f32 %v2091_v22, %v493_v13  ;;  %v455_v1 = vmul.f32 %v1521_v44, %v1961_v24  ;;  %v2228_v43 = vpop.permute.xlu0 %960 }
 0x16f   :  { %1449 = vmatprep.mubr.msk.f32.mxu1 %vm55_vm0, %v547_v15  ;;  %v509_v42 = vmul.f32 %v2085_v40, %v470_v60 }
 0x170   :  { %v1523_v61 = vpop.eup %1522  ;;  %1426 = vmatmul.mubr.msk.f32.gmra.mrb[12].mxu0 %vm55_vm0, %v532_v45  ;;  %v494_v2 = vmul.f32 %v2085_v40, %v455_v1 }
 0x171   :  { %v1525_v16 = vpop.eup %1524  ;;  %v548_v30 = vadd.f32 %v2091_v22, %v509_v42  ;;  %v471_v32 = vmul.f32 %v1523_v61, %v1964_v53  ;;  %v931_v39 = vpop.permute.xlu1 %930 }
 0x172   :  { %v533_v20 = vadd.f32 %v2091_v22, %v494_v2  ;;  %v456_v29 = vmul.f32 %v1525_v16, %v1973_v28  ;;  %v2232_v33 = vpop.permute.xlu0 %970 }
 0x173   :  { %1450 = vmatmul.mubr.msk.f32.gmra.mrb[12].mxu1 %vm55_vm0, %v548_v30  ;;  %v510_v24 = vmul.f32 %v2085_v40, %v471_v32 }
 0x174   :  { %v1527_v34 = vpop.eup %1526  ;;  %1428 = vmatprep.mubr.msk.f32.mxu0 %vm55_vm0, %v533_v20  ;;  %v495_v10 = vmul.f32 %v2085_v40, %v456_v29 }
 0x175   :  { %v549_v31 = vadd.f32 %v2091_v22, %v510_v24  ;;  %v472_v35 = vmul.f32 %v1527_v34, %v1976_v57  ;;  %v2220_v48 = vpop.permute.xlu1 %935 }
 0x176   :  { %v534_v38 = vadd.f32 %v2091_v22, %v495_v10  ;;  %v2236_v36 = vpop.permute.xlu0 %980 }
 0x177   :  { %1452 = vmatprep.mubr.msk.f32.mxu1 %vm55_vm0, %v549_v31  ;;  %v511_v53 = vmul.f32 %v2085_v40, %v472_v35 }
 0x178   :  { %1429 = vmatmul.mubr.msk.f32.gmra.mrb[14].mxu0 %vm55_vm0, %v534_v38 }
 0x179   :  { %v550_v28 = vadd.f32 %v2091_v22, %v511_v53  ;;  %v2222_v55 = vpop.permute.xlu1 %940 }
 0x17a   :  { %v2245_v50 = vpop.permute.xlu0 %990 }
 0x17b   :  { %1453 = vmatmul.mubr.msk.f32.gmra.mrb[14].mxu1 %vm55_vm0, %v550_v28 }
 0x17d   :  { %v2224_v57 = vpop.permute.xlu1 %945 }
 0x17e   :  { %v1001_v62 = vpop.permute.xlu0 %1000 }
 0x181   :  { %v2226_v46 = vpop.permute.xlu1 %950 }
 0x182   :  { %v1011_v15 = vpop.permute.xlu0 %1010 }
 0x185   :  { %v2230_v40 = vpop.permute.xlu1 %955 }
 0x186   :  { %v1021_v53 = vpop.permute.xlu0 %1020 }
 0x189   :  { %v2234_v22 = vpop.permute.xlu1 %965 }
 0x18d   :  { %v2238_v37 = vpop.permute.xlu1 %975 }
 0x191   :  { %v2247_v8 = vpop.permute.xlu1 %985 }
 0x195   :  { %v996_v3 = vpop.permute.xlu1 %995 }
 0x199   :  { %v1006_v1 = vpop.permute.xlu1 %1005 }
 0x213   :  { %v1409_v51 = vpop.f32.mrb[0].mxu0 }
 0x214   :  { %v728_v26 = vadd.f32 %v1409_v51, %v2243_v47  ;;  %v722_v58 = vpop.f32.mrb[1].mxu0 }
 0x215   :  { %v723_v21 = vadd.f32 %v2243_v47, %v722_v58 }
 0x216   :  { %v1074_v52 = vmul.f32 %v921_v5, %v728_v26  ;;  %v1433_v9 = vpop.f32.mrb[0].mxu1 }
 0x217   :  { %v1073_v59 = vmul.f32 %v916_v49, %v723_v21  ;;  %v808_v11 = vadd.f32 %v1433_v9, %v2243_v47  ;;  %v802_v54 = vpop.f32.mrb[1].mxu1 }
 0x218   :  { %v1338_v41 = vpack.c.bf16 %v1074_v52, %v1074_v52  ;;  %v803_v63 = vadd.f32 %v2243_v47, %v802_v54 }
 0x219   :  { %v1337_v4 = vpack.c.bf16 %v1073_v59, %v1073_v59  ;;  %v1090_v7 = vmul.f32 %v1001_v62, %v808_v11 }
 0x21a   :  { %1235 = vst.msk [vmem:[%s2427_s6 + $0x4] sm:$0xf] %vm1233_vm1, %v1338_v41  ;;  %v1089_v12 = vmul.f32 %v996_v3, %v803_v63  ;;  %v1031_v41 = vpop.permute.xlu0 %1030 }
 0x21b   :  { %1234 = vst.msk [vmem:[%s2427_s6] sm:$0xf] %vm1233_vm1, %v1337_v4  ;;  %v1354_v14 = vpack.c.bf16 %v1090_v7, %v1090_v7  ;;  %v1412_v56 = vpop.f32.mrb[2].mxu0 }
 0x21c   :  { %v1353_v18 = vpack.c.bf16 %v1089_v12, %v1089_v12  ;;  %v738_v6 = vadd.f32 %v1412_v56, %v2243_v47  ;;  %v732_v25 = vpop.f32.mrb[3].mxu0 }
 0x21d   :  { %1251 = vst.msk [vmem:[%s2427_s6 + $0x44] sm:$0xf] %vm1233_vm1, %v1354_v14  ;;  %v733_v27 = vadd.f32 %v2243_v47, %v732_v25 }
 0x21e   :  { %1250 = vst.msk [vmem:[%s2427_s6 + $0x40] sm:$0xf] %vm1233_vm1, %v1353_v18  ;;  %v1076_v0 = vmul.f32 %v931_v39, %v738_v6  ;;  %v1436_v19 = vpop.f32.mrb[2].mxu1 }
 0x21f   :  { %v1075_v23 = vmul.f32 %v926_v17, %v733_v27  ;;  %v818_v13 = vadd.f32 %v1436_v19, %v2243_v47  ;;  %v812_v44 = vpop.f32.mrb[3].mxu1  ;;  %v1016_v17 = vpop.permute.xlu1 %1015 }
 0x220   :  { %v1340_v60 = vpack.c.bf16 %v1076_v0, %v1076_v0  ;;  %v813_v45 = vadd.f32 %v2243_v47, %v812_v44  ;;  %v1041_v44 = vpop.permute.xlu0 %1040 }
 0x221   :  { %v1339_v42 = vpack.c.bf16 %v1075_v23, %v1075_v23  ;;  %v1092_v61 = vmul.f32 %v1011_v15, %v818_v13 }
 0x222   :  { %1237 = vst.msk [vmem:[%s2427_s6 + $0xc] sm:$0xf] %vm1233_vm1, %v1340_v60  ;;  %v1091_v2 = vmul.f32 %v1006_v1, %v813_v45 }
 0x223   :  { %1236 = vst.msk [vmem:[%s2427_s6 + $0x8] sm:$0xf] %vm1233_vm1, %v1339_v42  ;;  %v1356_v16 = vpack.c.bf16 %v1092_v61, %v1092_v61  ;;  %v1415_v30 = vpop.f32.mrb[4].mxu0  ;;  %v1026_v4 = vpop.permute.xlu1 %1025 }
 0x224   :  { %v1355_v32 = vpack.c.bf16 %v1091_v2, %v1091_v2  ;;  %v748_v20 = vadd.f32 %v1415_v30, %v2243_v47  ;;  %v742_v29 = vpop.f32.mrb[5].mxu0 }
 0x225   :  { %1253 = vst.msk [vmem:[%s2427_s6 + $0x4c] sm:$0xf] %vm1233_vm1, %v1356_v16  ;;  %v743_v24 = vadd.f32 %v2243_v47, %v742_v29 }
 0x226   :  { %1252 = vst.msk [vmem:[%s2427_s6 + $0x48] sm:$0xf] %vm1233_vm1, %v1355_v32  ;;  %v1078_v34 = vmul.f32 %v2222_v55, %v748_v20  ;;  %v1439_v10 = vpop.f32.mrb[4].mxu1 }
 0x227   :  { %v1077_v31 = vmul.f32 %v2220_v48, %v743_v24  ;;  %v828_v35 = vadd.f32 %v1439_v10, %v2243_v47  ;;  %v822_v38 = vpop.f32.mrb[5].mxu1  ;;  %v1036_v45 = vpop.permute.xlu1 %1035 }
 0x228   :  { %v1342_v28 = vpack.c.bf16 %v1078_v34, %v1078_v34  ;;  %v823_v5 = vadd.f32 %v2243_v47, %v822_v38 }
 0x229   :  { %v1341_v39 = vpack.c.bf16 %v1077_v31, %v1077_v31  ;;  %v1094_v49 = vmul.f32 %v1021_v53, %v828_v35  ;;  %v1051_v31 = vpop.permute.xlu0 %1050 }
 0x22a   :  { %1239 = vst.msk [vmem:[%s2427_s6 + $0x14] sm:$0xf] %vm1233_vm1, %v1342_v28  ;;  %v1093_v51 = vmul.f32 %v1016_v17, %v823_v5 }
 0x22b   :  { %1238 = vst.msk [vmem:[%s2427_s6 + $0x10] sm:$0xf] %vm1233_vm1, %v1341_v39  ;;  %v1358_v48 = vpack.c.bf16 %v1094_v49, %v1094_v49  ;;  %v1418_v55 = vpop.f32.mrb[6].mxu0  ;;  %v1046_v53 = vpop.permute.xlu1 %1045 }
 0x22c   :  { %v1357_v26 = vpack.c.bf16 %v1093_v51, %v1093_v51  ;;  %v758_v58 = vadd.f32 %v1418_v55, %v2243_v47  ;;  %v752_v21 = vpop.f32.mrb[7].mxu0 }
 0x22d   :  { %1255 = vst.msk [vmem:[%s2427_s6 + $0x54] sm:$0xf] %vm1233_vm1, %v1358_v48  ;;  %v753_v52 = vadd.f32 %v2243_v47, %v752_v21 }
 0x22e   :  { %1254 = vst.msk [vmem:[%s2427_s6 + $0x50] sm:$0xf] %vm1233_vm1, %v1357_v26  ;;  %v1080_v9 = vmul.f32 %v2226_v46, %v758_v58  ;;  %v1442_v59 = vpop.f32.mrb[6].mxu1 }
 0x22f   :  { %v1079_v11 = vmul.f32 %v2224_v57, %v753_v52  ;;  %v838_v54 = vadd.f32 %v1442_v59, %v2243_v47  ;;  %v832_v62 = vpop.f32.mrb[7].mxu1 }
 0x230   :  { %v1344_v63 = vpack.c.bf16 %v1080_v9, %v1080_v9  ;;  %v833_v3 = vadd.f32 %v2243_v47, %v832_v62  ;;  %v1061_v9 = vpop.permute.xlu0 %1060 }
 0x231   :  { %v1343_v7 = vpack.c.bf16 %v1079_v11, %v1079_v11  ;;  %v1096_v12 = vmul.f32 %v1031_v41, %v838_v54  ;;  %v1056_v54 = vpop.permute.xlu1 %1055 }
 0x232   :  { %1241 = vst.msk [vmem:[%s2427_s6 + $0x1c] sm:$0xf] %vm1233_vm1, %v1344_v63  ;;  %v1095_v14 = vmul.f32 %v1026_v4, %v833_v3 }
 0x233   :  { %1240 = vst.msk [vmem:[%s2427_s6 + $0x18] sm:$0xf] %vm1233_vm1, %v1343_v7  ;;  %v1360_v57 = vpack.c.bf16 %v1096_v12, %v1096_v12  ;;  %v1421_v46 = vpop.f32.mrb[8].mxu0 }
 0x234   :  { %v1359_v56 = vpack.c.bf16 %v1095_v14, %v1095_v14  ;;  %v768_v18 = vadd.f32 %v1421_v46, %v2243_v47  ;;  %v762_v6 = vpop.f32.mrb[9].mxu0 }
 0x235   :  { %1257 = vst.msk [vmem:[%s2427_s6 + $0x5c] sm:$0xf] %vm1233_vm1, %v1360_v57  ;;  %v763_v25 = vadd.f32 %v2243_v47, %v762_v6  ;;  %v1071_v6 = vpop.permute.xlu0 %1070 }
 0x236   :  { %1256 = vst.msk [vmem:[%s2427_s6 + $0x58] sm:$0xf] %vm1233_vm1, %v1359_v56  ;;  %v1082_v27 = vmul.f32 %v2228_v43, %v768_v18  ;;  %v1445_v0 = vpop.f32.mrb[8].mxu1 }
 0x237   :  { %v1081_v19 = vmul.f32 %v2230_v40, %v763_v25  ;;  %v848_v23 = vadd.f32 %v1445_v0, %v2243_v47  ;;  %v842_v13 = vpop.f32.mrb[9].mxu1  ;;  %v1066_v0 = vpop.permute.xlu1 %1065 }
 0x238   :  { %v1346_v15 = vpack.c.bf16 %v1082_v27, %v1082_v27  ;;  %v843_v60 = vadd.f32 %v2243_v47, %v842_v13 }
 0x239   :  { %v1345_v1 = vpack.c.bf16 %v1081_v19, %v1081_v19  ;;  %v1098_v42 = vmul.f32 %v1041_v44, %v848_v23 }
 0x23a   :  { %1243 = vst.msk [vmem:[%s2427_s6 + $0x24] sm:$0xf] %vm1233_vm1, %v1346_v15  ;;  %v1097_v61 = vmul.f32 %v1036_v45, %v843_v60 }
 0x23b   :  { %1242 = vst.msk [vmem:[%s2427_s6 + $0x20] sm:$0xf] %vm1233_vm1, %v1345_v1  ;;  %v1362_v43 = vpack.c.bf16 %v1098_v42, %v1098_v42  ;;  %v1424_v40 = vpop.f32.mrb[10].mxu0 }
 0x23c   :  { %v1361_v2 = vpack.c.bf16 %v1097_v61, %v1097_v61  ;;  %v778_v16 = vadd.f32 %v1424_v40, %v2243_v47  ;;  %v772_v30 = vpop.f32.mrb[11].mxu0 }
 0x23d   :  { %1259 = vst.msk [vmem:[%s2427_s6 + $0x64] sm:$0xf] %vm1233_vm1, %v1362_v43  ;;  %v773_v32 = vadd.f32 %v2243_v47, %v772_v30 }
 0x23e   :  { %1258 = vst.msk [vmem:[%s2427_s6 + $0x60] sm:$0xf] %vm1233_vm1, %v1361_v2  ;;  %v1084_v20 = vmul.f32 %v2232_v33, %v778_v16  ;;  %v1448_v29 = vpop.f32.mrb[10].mxu1 }
 0x23f   :  { %v1083_v24 = vmul.f32 %v2234_v22, %v773_v32  ;;  %v858_v34 = vadd.f32 %v1448_v29, %v2243_v47  ;;  %v852_v10 = vpop.f32.mrb[11].mxu1 }
 0x240   :  { %v1348_v35 = vpack.c.bf16 %v1084_v20, %v1084_v20  ;;  %v853_v38 = vadd.f32 %v2243_v47, %v852_v10 }
 0x241   :  { %v1347_v28 = vpack.c.bf16 %v1083_v24, %v1083_v24  ;;  %v1100_v5 = vmul.f32 %v1051_v31, %v858_v34 }
 0x242   :  { %1245 = vst.msk [vmem:[%s2427_s6 + $0x2c] sm:$0xf] %vm1233_vm1, %v1348_v35  ;;  %v1099_v17 = vmul.f32 %v1046_v53, %v853_v38 }
 0x243   :  { %1244 = vst.msk [vmem:[%s2427_s6 + $0x28] sm:$0xf] %vm1233_vm1, %v1347_v28  ;;  %v1364_v33 = vpack.c.bf16 %v1100_v5, %v1100_v5  ;;  %v1427_v22 = vpop.f32.mrb[12].mxu0 }
 0x244   :  { %v1363_v39 = vpack.c.bf16 %v1099_v17, %v1099_v17  ;;  %v788_v49 = vadd.f32 %v1427_v22, %v2243_v47  ;;  %v782_v51 = vpop.f32.mrb[13].mxu0 }
 0x245   :  { %1261 = vst.msk [vmem:[%s2427_s6 + $0x6c] sm:$0xf] %vm1233_vm1, %v1364_v33  ;;  %v783_v48 = vadd.f32 %v2243_v47, %v782_v51 }
 0x246   :  { %1260 = vst.msk [vmem:[%s2427_s6 + $0x68] sm:$0xf] %vm1233_vm1, %v1363_v39  ;;  %v1086_v55 = vmul.f32 %v2236_v36, %v788_v49  ;;  %v1451_v26 = vpop.f32.mrb[12].mxu1 }
 0x247   :  { %v1085_v58 = vmul.f32 %v2238_v37, %v783_v48  ;;  %v868_v21 = vadd.f32 %v1451_v26, %v2243_v47  ;;  %v862_v52 = vpop.f32.mrb[13].mxu1 }
 0x248   :  { %v1350_v59 = vpack.c.bf16 %v1086_v55, %v1086_v55  ;;  %v863_v11 = vadd.f32 %v2243_v47, %v862_v52 }
 0x249   :  { %v1349_v62 = vpack.c.bf16 %v1085_v58, %v1085_v58  ;;  %v1102_v41 = vmul.f32 %v1061_v9, %v868_v21 }
 0x24a   :  { %1247 = vst.msk [vmem:[%s2427_s6 + $0x34] sm:$0xf] %vm1233_vm1, %v1350_v59  ;;  %v1101_v63 = vmul.f32 %v1056_v54, %v863_v11 }
 0x24b   :  { %1246 = vst.msk [vmem:[%s2427_s6 + $0x30] sm:$0xf] %vm1233_vm1, %v1349_v62  ;;  %v1366_v36 = vpack.c.bf16 %v1102_v41, %v1102_v41  ;;  %v1430_v37 = vpop.f32.mrb[14].mxu0 }
 0x24c   :  { %v1365_v3 = vpack.c.bf16 %v1101_v63, %v1101_v63  ;;  %v798_v4 = vadd.f32 %v1430_v37, %v2243_v47  ;;  %v792_v7 = vpop.f32.mrb[15].mxu0 }
 0x24d   :  { %1263 = vst.msk [vmem:[%s2427_s6 + $0x74] sm:$0xf] %vm1233_vm1, %v1366_v36  ;;  %v793_v12 = vadd.f32 %v2243_v47, %v792_v7 }
 0x24e   :  { %1262 = vst.msk [vmem:[%s2427_s6 + $0x70] sm:$0xf] %vm1233_vm1, %v1365_v3  ;;  %v1088_v14 = vmul.f32 %v2245_v50, %v798_v4  ;;  %v1454_v57 = vpop.f32.mrb[14].mxu1 }
 0x24f   :  { %v1087_v46 = vmul.f32 %v2247_v8, %v793_v12  ;;  %v878_v56 = vadd.f32 %v1454_v57, %v2243_v47  ;;  %v872_v18 = vpop.f32.mrb[15].mxu1 }
 0x250   :  { %v1352_v25 = vpack.c.bf16 %v1088_v14, %v1088_v14  ;;  %v873_v27 = vadd.f32 %v2243_v47, %v872_v18 }
 0x251   :  { %v1351_v19 = vpack.c.bf16 %v1087_v46, %v1087_v46  ;;  %v1104_v23 = vmul.f32 %v1071_v6, %v878_v56 }
 0x252   :  { %1249 = vst.msk [vmem:[%s2427_s6 + $0x3c] sm:$0xf] %vm1233_vm1, %v1352_v25  ;;  %v1103_v13 = vmul.f32 %v1066_v0, %v873_v27 }
 0x253   :  { %1248 = vst.msk [vmem:[%s2427_s6 + $0x38] sm:$0xf] %vm1233_vm1, %v1351_v19  ;;  %v1368_v50 = vpack.c.bf16 %v1104_v23, %v1104_v23 }
 0x254   :  { %v1367_v8 = vpack.c.bf16 %v1103_v13, %v1103_v13 }
 0x255   :  { %1265 = vst.msk [vmem:[%s2427_s6 + $0x7c] sm:$0xf] %vm1233_vm1, %v1368_v50 }
 0x256   :  { %1264 = vst.msk [vmem:[%s2427_s6 + $0x78] sm:$0xf] %vm1233_vm1, %v1367_v8 }

</bundles_post_ra>
